<compile_context>
chip_gen: v7x
topology: tpu7x:2x2x1
jax: 0.10.0
libtpu: 0.0.40
codegen_flags: <defaults>
</compile_context>

<pallas_src>
import functools
import math

import jax
import jax.numpy as jnp
from jax.experimental import pallas as pl
from jax.experimental.pallas import tpu as pltpu


def _mha_kernel(x_ref, w_ref, o_ref, *, num_heads, head_size):
    """One grid step == one batch tile. Fused QKV projection + batched (over
    head x batch) causal attention; one lane-dense full-block output store."""
    H, hs = num_heads, head_size
    bt, T, C = x_ref.shape

    # ---- Fused QKV projection: one big lane-dense MXU matmul, bf16 in / f32 acc.
    x = x_ref[...].reshape(bt * T, C).astype(jnp.bfloat16)          # (bt*T, C)
    qkv = jnp.dot(x, w_ref[...], preferred_element_type=jnp.float32)  # (bt*T, 3*H*hs) f32
    # (1/sqrt(hs) scale is already folded into the q columns of w_ref.)

    # ---- One relayout to head-major (paid once, not per head): columns are
    # grouped [q_h0..q_h{H-1} | k_h0.. | v_h0..]; stack the H hs-wide slices
    # onto a leading batch axis, then fold (H, bt) into a single batch dim.
    def head_major(group):
        base = group * H * hs
        g = jnp.stack(
            [qkv[:, base + h * hs: base + (h + 1) * hs] for h in range(H)],
            axis=0,
        )                                                            # (H, bt*T, hs)
        return g.reshape(H * bt, T, hs).astype(jnp.bfloat16)         # (H*bt, T, hs)

    q = head_major(0)
    k = head_major(1)
    v = head_major(2)

    # ---- Scores: batched MXU contraction over hs (no explicit k.T), f32 acc.
    s = jnp.einsum("nqd,nkd->nqk", q, k,
                   preferred_element_type=jnp.float32)               # (H*bt, T, T)

    # Causal mask (TPU needs >= 2-D iota); -1e30 ~ -inf after max subtraction,
    # and the diagonal is always unmasked so no row is fully masked.
    row = jax.lax.broadcasted_iota(jnp.int32, (T, T), 0)
    col = jax.lax.broadcasted_iota(jnp.int32, (T, T), 1)
    causal = row >= col
    s = jnp.where(causal[None, :, :], s, -1e30)

    # ---- Numerically stable softmax, f32 on the VPU (safe on v5e: no bf16 VALU).
    m = jnp.max(s, axis=-1, keepdims=True)
    p = jnp.exp(s - m)                                               # unnormalized
    inv = pl.reciprocal(jnp.sum(p, axis=-1, keepdims=True),
                        approx=True)                                 # EUP slot, (H*bt, T, 1)

    # ---- PV matmul (bf16 feeds, f32 acc); normalization deferred to the small
    # (T, hs) result instead of the (T, T) probability matrix.
    o = jnp.einsum("nqk,nkd->nqd", p.astype(jnp.bfloat16), v,
                   preferred_element_type=jnp.float32)               # (H*bt, T, hs)
    o = o * inv

    # ---- Single lane-dense full-block store (no per-head masked column stores).
    o_ref[...] = o.reshape(H, bt, T, hs).astype(o_ref.dtype)


def prepare_fused_qkv_weights(wq, wk, wv):
    """One-time weight prep (keep OFF the per-call hot path).

    wq/wk/wv: (H, C, hs) f32 -> (C, 3*H*hs) bf16 with columns laid out
    [q_h0..q_h{H-1} | k_h0.. | v_h0..] and the 1/sqrt(hs) scale folded into
    the q columns.
    """
    H, C, hs = wq.shape
    scale = 1.0 / math.sqrt(hs)
    stacked = jnp.stack([wq * scale, wk, wv], axis=0)                # (3, H, C, hs)
    return (
        stacked.transpose(2, 0, 1, 3)                                # (C, 3, H, hs)
        .reshape(C, 3 * H * hs)
        .astype(jnp.bfloat16)                                        # half-size DMA / VMEM
    )


def multi_head_attention(x, w_fused, num_heads, head_size, *, batch_tile=None,
                         vmem_limit_bytes=32 * 1024 * 1024):
    """x: (B, T, C); w_fused from prepare_fused_qkv_weights -> (B, T, H*hs)."""
    B, T, C = x.shape
    H, hs = num_heads, head_size
    assert w_fused.shape == (C, 3 * H * hs)

    if batch_tile is None:
        # Fold several batch elements per grid step at small shapes so the step
        # overhead (~0.35 us) and partially filled MXU tiles are amortized.
        batch_tile = 1
        for cand in range(B, 0, -1):
            if B % cand == 0 and cand * T <= 1024:
                batch_tile = cand
                break
    assert B % batch_tile == 0

    kernel = functools.partial(_mha_kernel, num_heads=H, head_size=hs)

    # Kernel writes a head-major (H, B, T, hs) slab with one full-block store;
    # the cheap transpose/reshape back to (B, T, H*hs) happens here.
    out = pl.pallas_call(
        kernel,
        out_shape=jax.ShapeDtypeStruct((H, B, T, hs), x.dtype),
        grid_spec=pltpu.PrefetchScalarGridSpec(
            num_scalar_prefetch=0,
            grid=(B // batch_tile,),
            in_specs=[
                pl.BlockSpec((batch_tile, T, C), lambda b: (b, 0, 0)),   # x, per batch tile
                pl.BlockSpec((C, 3 * H * hs), lambda b: (0, 0)),         # fused bf16 weights
            ],
            out_specs=pl.BlockSpec((H, batch_tile, T, hs), lambda b: (0, b, 0, 0)),
        ),
        compiler_params=pltpu.CompilerParams(
            dimension_semantics=("parallel",),        # batch tiles shard across TCs (v7x)
            # Explicit scoped-VMEM limit (raise / re-derive per generation for large T).
            vmem_limit_bytes=vmem_limit_bytes,
        ),
    )(x, w_fused)

    return out.transpose(1, 2, 0, 3).reshape(B, T, H * hs)


def _reference(x, wq, wk, wv):
    """Pure-JAX f32 reference replicating the PyTorch module semantics."""
    B, T, C = x.shape
    H, _, hs = wq.shape
    outs = []
    for h in range(H):
        q = x @ wq[h]
        k = x @ wk[h]
        v = x @ wv[h]
        s = (q @ jnp.swapaxes(k, -1, -2)) * (hs ** -0.5)
        mask = jnp.tril(jnp.ones((T, T), dtype=bool))
        s = jnp.where(mask, s, -jnp.inf)
        p = jax.nn.softmax(s, axis=-1)
        outs.append(p @ v)
    return jnp.concatenate(outs, axis=-1)


if __name__ == "__main__":
    # Small deterministic config consistent with the module:
    #   num_heads=4, head_size=8, block_size(T)=8, n_embed(C)=32, batch=2
    B, T, C, H, hs = 2, 8, 32, 4, 8

    key = jax.random.PRNGKey(0)
    kx, kq, kk, kv = jax.random.split(key, 4)

    x = jax.random.normal(kx, (B, T, C), dtype=jnp.float32)

    # nn.Linear(C, hs, bias=False) default init: U(-1/sqrt(C), 1/sqrt(C))
    bound = 1.0 / math.sqrt(C)
    wq = jax.random.uniform(kq, (H, C, hs), jnp.float32, -bound, bound)
    wk = jax.random.uniform(kk, (H, C, hs), jnp.float32, -bound, bound)
    wv = jax.random.uniform(kv, (H, C, hs), jnp.float32, -bound, bound)

    # One-time weight fusion (off the hot path).
    w_fused = prepare_fused_qkv_weights(wq, wk, wv)

    out = multi_head_attention(x, w_fused, H, hs)
    out = jax.block_until_ready(out)

    ref = _reference(x, wq, wk, wv)
    assert out.shape == (B, T, H * hs)
    # Tolerance accounts for bf16 MXU feeds (projection + attention) and the
    # approx EUP reciprocal; f32 accumulation keeps the error well inside this.
    assert jnp.allclose(out, ref, atol=3e-2, rtol=3e-2), "mismatch vs reference"

    print("KERNEL_OK")
</pallas_src>

<mosaic_0001>
module attributes {stable_mosaic.version = 11 : i64} {
  func.func @_mha_kernel(%arg0: i32, %arg1: memref<2x8x32xf32, #tpu.memory_space<vmem>>, %arg2: memref<32x96xbf16, #tpu.memory_space<vmem>>, %arg3: memref<4x2x8x8xf32, #tpu.memory_space<vmem>>) attributes {dimension_semantics = [#tpu.dimension_semantics<parallel>], iteration_bounds = array<i64: 1>, scalar_prefetch = 0 : i64, scratch_operands = 0 : i64, tpu.core_type = #tpu.core_type<tc>, window_params = [{transform_indices = @transform_0, window_bounds = array<i64: 2, 8, 32>}, {pipeline_mode = #tpu.pipeline_mode<synchronous>, transform_indices = @transform_1, window_bounds = array<i64: 32, 96>}, {transform_indices = @transform_2, window_bounds = array<i64: 4, 2, 8, 8>}]} {
    %c0 = arith.constant 0 : index
    %c0_0 = arith.constant 0 : index
    %c0_1 = arith.constant 0 : index
    %0 = vector.load %arg1[%c0, %c0_0, %c0_1] : memref<2x8x32xf32, #tpu.memory_space<vmem>>, vector<2x8x32xf32>
    %1 = vector.shape_cast %0 : vector<2x8x32xf32> to vector<16x32xf32>
    %2 = arith.truncf %1 : vector<16x32xf32> to vector<16x32xbf16>
    %c0_2 = arith.constant 0 : index
    %c0_3 = arith.constant 0 : index
    %3 = vector.load %arg2[%c0_2, %c0_3] : memref<32x96xbf16, #tpu.memory_space<vmem>>, vector<32x96xbf16>
    %cst = arith.constant dense<0.000000e+00> : vector<16x96xf32>
    %4 = tpu.matmul %2, %3, %cst {dimension_numbers = #tpu.dot_dimension_numbers<[1], [0], [0], [1], [0, 0, 1, 1], [], []>} : vector<16x32xbf16>, vector<32x96xbf16>, vector<16x96xf32> -> vector<16x96xf32>
    %5 = vector.extract_strided_slice %4 {offsets = [0, 0], sizes = [16, 8], strides = [1, 1]} : vector<16x96xf32> to vector<16x8xf32>
    %6 = vector.extract_strided_slice %4 {offsets = [0, 8], sizes = [16, 8], strides = [1, 1]} : vector<16x96xf32> to vector<16x8xf32>
    %7 = vector.extract_strided_slice %4 {offsets = [0, 16], sizes = [16, 8], strides = [1, 1]} : vector<16x96xf32> to vector<16x8xf32>
    %8 = vector.extract_strided_slice %4 {offsets = [0, 24], sizes = [16, 8], strides = [1, 1]} : vector<16x96xf32> to vector<16x8xf32>
    %9 = vector.shape_cast %5 : vector<16x8xf32> to vector<1x16x8xf32>
    %10 = vector.shape_cast %6 : vector<16x8xf32> to vector<1x16x8xf32>
    %11 = vector.shape_cast %7 : vector<16x8xf32> to vector<1x16x8xf32>
    %12 = vector.shape_cast %8 : vector<16x8xf32> to vector<1x16x8xf32>
    %13 = tpu.concatenate %9, %10, %11, %12 in 0 : vector<1x16x8xf32>, vector<1x16x8xf32>, vector<1x16x8xf32>, vector<1x16x8xf32> -> vector<4x16x8xf32>
    %14 = vector.shape_cast %13 : vector<4x16x8xf32> to vector<8x8x8xf32>
    %15 = arith.truncf %14 : vector<8x8x8xf32> to vector<8x8x8xbf16>
    %16 = vector.extract_strided_slice %4 {offsets = [0, 32], sizes = [16, 8], strides = [1, 1]} : vector<16x96xf32> to vector<16x8xf32>
    %17 = vector.extract_strided_slice %4 {offsets = [0, 40], sizes = [16, 8], strides = [1, 1]} : vector<16x96xf32> to vector<16x8xf32>
    %18 = vector.extract_strided_slice %4 {offsets = [0, 48], sizes = [16, 8], strides = [1, 1]} : vector<16x96xf32> to vector<16x8xf32>
    %19 = vector.extract_strided_slice %4 {offsets = [0, 56], sizes = [16, 8], strides = [1, 1]} : vector<16x96xf32> to vector<16x8xf32>
    %20 = vector.shape_cast %16 : vector<16x8xf32> to vector<1x16x8xf32>
    %21 = vector.shape_cast %17 : vector<16x8xf32> to vector<1x16x8xf32>
    %22 = vector.shape_cast %18 : vector<16x8xf32> to vector<1x16x8xf32>
    %23 = vector.shape_cast %19 : vector<16x8xf32> to vector<1x16x8xf32>
    %24 = tpu.concatenate %20, %21, %22, %23 in 0 : vector<1x16x8xf32>, vector<1x16x8xf32>, vector<1x16x8xf32>, vector<1x16x8xf32> -> vector<4x16x8xf32>
    %25 = vector.shape_cast %24 : vector<4x16x8xf32> to vector<8x8x8xf32>
    %26 = arith.truncf %25 : vector<8x8x8xf32> to vector<8x8x8xbf16>
    %27 = vector.extract_strided_slice %4 {offsets = [0, 64], sizes = [16, 8], strides = [1, 1]} : vector<16x96xf32> to vector<16x8xf32>
    %28 = vector.extract_strided_slice %4 {offsets = [0, 72], sizes = [16, 8], strides = [1, 1]} : vector<16x96xf32> to vector<16x8xf32>
    %29 = vector.extract_strided_slice %4 {offsets = [0, 80], sizes = [16, 8], strides = [1, 1]} : vector<16x96xf32> to vector<16x8xf32>
    %30 = vector.extract_strided_slice %4 {offsets = [0, 88], sizes = [16, 8], strides = [1, 1]} : vector<16x96xf32> to vector<16x8xf32>
    %31 = vector.shape_cast %27 : vector<16x8xf32> to vector<1x16x8xf32>
    %32 = vector.shape_cast %28 : vector<16x8xf32> to vector<1x16x8xf32>
    %33 = vector.shape_cast %29 : vector<16x8xf32> to vector<1x16x8xf32>
    %34 = vector.shape_cast %30 : vector<16x8xf32> to vector<1x16x8xf32>
    %35 = tpu.concatenate %31, %32, %33, %34 in 0 : vector<1x16x8xf32>, vector<1x16x8xf32>, vector<1x16x8xf32>, vector<1x16x8xf32> -> vector<4x16x8xf32>
    %36 = vector.shape_cast %35 : vector<4x16x8xf32> to vector<8x8x8xf32>
    %37 = arith.truncf %36 : vector<8x8x8xf32> to vector<8x8x8xbf16>
    "tpu.trace_start"() <{level = 10 : i32, message = "nqd,nkd->nqk"}> : () -> ()
    %cst_4 = arith.constant dense<0.000000e+00> : vector<8x8x8xf32>
    %38 = tpu.matmul %15, %26, %cst_4 {dimension_numbers = #tpu.dot_dimension_numbers<[2], [2], [1], [1], [0, 0, 0, 1, 1, 1], [0], [0]>} : vector<8x8x8xbf16>, vector<8x8x8xbf16>, vector<8x8x8xf32> -> vector<8x8x8xf32>
    "tpu.trace_stop"() : () -> ()
    %39 = tpu.iota {dimensions = array<i32: 0>} : vector<8x8xi32>
    %40 = tpu.iota {dimensions = array<i32: 1>} : vector<8x8xi32>
    %41 = arith.cmpi sge, %39, %40 : vector<8x8xi32>
    %42 = vector.shape_cast %41 : vector<8x8xi1> to vector<1x8x8xi1>
    %cst_5 = arith.constant -1.000000e+30 : f32
    %43 = vector.shape_cast %42 : vector<1x8x8xi1> to vector<1x8x8xi1>
    %44 = vector.broadcast %43 : vector<1x8x8xi1> to vector<8x8x8xi1>
    %45 = vector.broadcast %cst_5 : f32 to vector<8x8x8xf32>
    %46 = arith.select %44, %38, %45 : vector<8x8x8xi1>, vector<8x8x8xf32>
    %cst_6 = arith.constant dense<0xFF800000> : vector<8x8xf32>
    %47 = vector.multi_reduction <maximumf>, %46, %cst_6 [2] : vector<8x8x8xf32> to vector<8x8xf32>
    %48 = vector.shape_cast %47 : vector<8x8xf32> to vector<8x8x1xf32>
    %49 = vector.broadcast %48 : vector<8x8x1xf32> to vector<8x8x8xf32>
    %50 = arith.subf %46, %49 : vector<8x8x8xf32>
    %51 = math.exp %50 : vector<8x8x8xf32>
    %cst_7 = arith.constant dense<0.000000e+00> : vector<8x8xf32>
    %52 = vector.multi_reduction <add>, %51, %cst_7 [2] : vector<8x8x8xf32> to vector<8x8xf32>
    %53 = vector.shape_cast %52 : vector<8x8xf32> to vector<8x8x1xf32>
    %54 = tpu.reciprocal %53 {approx = true} : vector<8x8x1xf32> -> vector<8x8x1xf32>
    %55 = arith.truncf %51 : vector<8x8x8xf32> to vector<8x8x8xbf16>
    "tpu.trace_start"() <{level = 10 : i32, message = "nqk,nkd->nqd"}> : () -> ()
    %cst_8 = arith.constant dense<0.000000e+00> : vector<8x8x8xf32>
    %56 = tpu.matmul %55, %37, %cst_8 {dimension_numbers = #tpu.dot_dimension_numbers<[2], [1], [1], [2], [0, 0, 0, 1, 1, 2], [0], [0]>} : vector<8x8x8xbf16>, vector<8x8x8xbf16>, vector<8x8x8xf32> -> vector<8x8x8xf32>
    "tpu.trace_stop"() : () -> ()
    %57 = vector.broadcast %54 : vector<8x8x1xf32> to vector<8x8x8xf32>
    %58 = arith.mulf %56, %57 : vector<8x8x8xf32>
    %59 = vector.shape_cast %58 : vector<8x8x8xf32> to vector<4x2x8x8xf32>
    %c0_9 = arith.constant 0 : index
    %c0_10 = arith.constant 0 : index
    %c0_11 = arith.constant 0 : index
    %c0_12 = arith.constant 0 : index
    %60 = vector.load %arg3[%c0_9, %c0_10, %c0_11, %c0_12] : memref<4x2x8x8xf32, #tpu.memory_space<vmem>>, vector<4x2x8x8xf32>
    tpu.vector_store %arg3[%c0_9, %c0_10, %c0_11, %c0_12], %59 {strides = array<i32>} : memref<4x2x8x8xf32, #tpu.memory_space<vmem>>, vector<4x2x8x8xf32>,
    return
  }
  func.func @transform_0(%arg0: i32) -> (i32, i32, i32) {
    %c0_i32 = arith.constant 0 : i32
    %c0_i32_0 = arith.constant 0 : i32
    %c0_i32_1 = arith.constant 0 : i32
    return %arg0, %c0_i32, %c0_i32_0 : i32, i32, i32
  }
  func.func @transform_1(%arg0: i32) -> (i32, i32) {
    %c0_i32 = arith.constant 0 : i32
    %c0_i32_0 = arith.constant 0 : i32
    %c0_i32_1 = arith.constant 0 : i32
    return %c0_i32, %c0_i32_0 : i32, i32
  }
  func.func @transform_2(%arg0: i32) -> (i32, i32, i32, i32) {
    %c0_i32 = arith.constant 0 : i32
    %c0_i32_0 = arith.constant 0 : i32
    %c0_i32_1 = arith.constant 0 : i32
    %c0_i32_2 = arith.constant 0 : i32
    return %c0_i32, %arg0, %c0_i32_0, %c0_i32_1 : i32, i32, i32, i32
  }
}

</mosaic_0001>

<bundles_post_ra>
// kernel: tpu_custom_call.1
= control target key start
LH: loop header
LB: loop body
LE: loop exit
PB: predicated region body
PF: predicated region fallthrough
CT: control target
= control target key end

     0   :  { %7 = vsyncpa [#allocation3], 0  ;;  %s1592_s0 = inlined_call_operand.hbm [shape: f32[2,8,32], index: 0, kind: input, shape index: {}]   ;;  %s1593_s1 = inlined_call_operand.hbm [shape: bf16[32,96], index: 1, kind: input, shape index: {}]   ;;  %s1594_s2 = inlined_call_operand.hbm [shape: f32[4,2,8,8], index: 2, kind: output, shape index: {}]  }
   0x1   :  { %8 = vsyncpa [#allocation6], 0 }
   0x2   :  { %9 = vsyncpa [#allocation4], 0  ;;  %s1340_s9 = smov [#allocation2]   ;;  %s1268_s13 = scalar_lea.hbm %s1592_s0, 256 }
   0x3   :  { %s15_s10 = sshll.u32 %s1340_s9, 4  ;;  %p1269_p0 = scmp.ne.s32.totalorder %s1592_s0, %s1268_s13  ;;  %s16_s10 = int_to_ptr.vmem [resolvable:$true] %s15_s10 }
   0x4   :  { %p1272_p1 = scmp.lt.u32.totalorder %s1268_s13, %s1592_s0 }
   0x6   :  { %p1274_p2 = pnand %p1272_p1, %p1269_p0 }
   0x8   :  { %1277 = shalt.err (!%p1274_p2)
}
   0x9   :  { %s1278_s18 = scalar_lea.vmem %s16_s10, 256  ;;  %p1283_p4 = scmp.lt.s32.totalorder %s16_s10, %s16_s10 }
   0xa   :  { %p1279_p3 = scmp.ne.s32.totalorder %s16_s10, %s1278_s18  ;;  %p1284_p5 = scmp.lt.s32.totalorder %s1278_s18, %s1278_s18 }
   0xc   :  { %p1285_p6 = por %p1284_p5, %p1283_p4 }
   0xe   :  { %p1286_p7 = pnand %p1285_p6, %p1279_p3 }
  0x10   :  { %1289 = shalt.err (!%p1286_p7)
}
  0x11   :  { %s1341_s19 = smov 128   ;;  %s1342_s20 = smov 8  }
  0x12   :  { %21 = dma.hbm_to_vmem [thread:$0]  %s1592_s0, 256, %s16_s10, [#allocation3], %s1341_s19, %s1341_s19, %s1342_s20  }
  0x13   :  { %s1343_s23 = smov [#allocation5]   ;;  %s1290_s27 = scalar_lea.hbm %s1593_s1, 256 }
  0x14   :  { %s27_s24 = sshll.u32 %s1343_s23, 4  ;;  %p1291_p8 = scmp.ne.s32.totalorder %s1593_s1, %s1290_s27  ;;  %s28_s24 = int_to_ptr.vmem [resolvable:$true] %s27_s24 }
  0x15   :  { %p1294_p9 = scmp.lt.u32.totalorder %s1290_s27, %s1593_s1 }
  0x17   :  { %p1296_p10 = pnand %p1294_p9, %p1291_p8 }
  0x19   :  { %1299 = shalt.err (!%p1296_p10)
}
  0x1a   :  { %s1300_s4 = scalar_lea.vmem %s28_s24, 256  ;;  %p1305_p12 = scmp.lt.s32.totalorder %s28_s24, %s28_s24 }
  0x1b   :  { %p1301_p11 = scmp.ne.s32.totalorder %s28_s24, %s1300_s4  ;;  %p1306_p13 = scmp.lt.s32.totalorder %s1300_s4, %s1300_s4 }
  0x1d   :  { %p1307_p0 = por %p1306_p13, %p1305_p12 }
  0x1f   :  { %p1308_p1 = pnand %p1307_p0, %p1301_p11 }
  0x21   :  { %1311 = shalt.err (!%p1308_p1)
}
  0x22   :  { %s1344_s0 = smov 64   ;;  %s1345_s5 = smov 4  }
  0x23   :  { %33 = dma.hbm_to_vmem [thread:$0]  %s1593_s1, 256, %s28_s24, [#allocation6], %s1344_s0, %s1344_s0, %s1345_s5  }
  0x24   :  { %1334 = dma.done.wait [#allocation3], 256  }
  0x25   :  { %1335 = vsyncadd [#allocation3], 4294967040 }
  0x26   :  { %1336 = dma.done.wait [#allocation6], 256  }
  0x27   :  { %1337 = vsyncadd [#allocation6], 4294967040  ;;  %v1346_v0 = vmov 0.0   ;;  %vm1347_vm0 = vmmov 0   ;;  %v1234_v1 = vld [vmem:[#allocation5] sm:$0xff]   ;;  %v1235_v2 = vld [vmem:[#allocation5 + $0x8] sm:$0xff]   ;;  %v526_v48 = vlaneseq }
  0x28   :  { %1102 = vmatprep.subr.bf16.mxu0 %v1346_v0  ;;  %1106 = vmatprep.mubr.msk.bf16.mxu0 %vm1347_vm0, %v1346_v0  ;;  %v41_v3 = vld [vmem:[#allocation2] sm:$0xff]  ;;  %v42_v4 = vld [vmem:[#allocation2 + $0x8] sm:$0xff]  ;;  %vm60_vm1 = vcmask 261120   ;;  %s1348_s1 = smov 104   ;;  %s1349_s8 = smov 120   ;;  %vm136_vm2 = vcmask 64512  }
  0x29   :  { %1110 = vmatprep.subr.bf16.mxu1 %v1346_v0  ;;  %1112 = vmatprep.mubr.msk.bf16.mxu1 %vm1347_vm0, %v1346_v0  ;;  %v43_v5 = vpack.c.bf16 %v42_v4, %v41_v3  ;;  %s1350_s9 = smov 96   ;;  %s1351_s10 = smov 112   ;;  %vm634_vm3 = vcmask 1043456   ;;  %v527_v49 = vshrl.u32 %v526_v48, 7  ;;  %v529_v50 = vand.u32 127, %v526_v48 }
  0x2a   :  { %1103 = vmatpush3.bf16.msra.mxu0 %v1234_v1  ;;  %s1352_s11 = smov [#allocation7]  }
  0x2b   :  { %1104 = vmatprep.subr.bf16.mxu0 %v1346_v0  ;;  %vm1479_vm4 = vcmp.ge.s32.totalorder %v527_v49, %v529_v50  ;;  %s1035_s12 = sshll.u32 %s1352_s11, 4  ;;  %s1036_s12 = int_to_ptr.vmem [resolvable:$true] %s1035_s12 }
  0x2c   :  { %s1312_s13 = scalar_lea.vmem %s1036_s12, 1024  ;;  %p1317_p3 = scmp.lt.s32.totalorder %s1036_s12, %s1036_s12 }
  0x2d   :  { %p1313_p2 = scmp.ne.s32.totalorder %s1036_s12, %s1312_s13  ;;  %p1318_p4 = scmp.lt.s32.totalorder %s1312_s13, %s1312_s13 }
  0x2e   :  { %1105 = vmatpush3.bf16.msra.mxu0 %v1235_v2 }
  0x2f   :  { %1116 = vmatprep.subr.bf16.mxu0 %v1346_v0  ;;  %p1319_p5 = por %p1318_p4, %p1317_p3 }
  0x31   :  { %1107 = vmatmul.mubr.msk.bf16.vlgmr.msra.gmra.mrb[0].mxu0 %vm60_vm1, %v43_v5  ;;  %p1320_p6 = pnand %p1319_p5, %p1313_p2 }
  0x32   :  { %1118 = vmatprep.mubr.msk.bf16.mxu0 %vm1347_vm0, %v1346_v0 }
 0x104   :  { %v98_v6 = vpop.f32.mrb[0].mxu0 }
 0x105   :  { %v1108_v7 = vpop.f32.mrb[1].mxu0  ;;  %v125_v11 = vpack.c.bf16 %v98_v6, %v98_v6 }
 0x106   :  { %v101_v8 = vpop.f32.mrb[2].mxu0 }
 0x107   :  { %v1109_v9 = vpop.f32.mrb[3].mxu0  ;;  %v1229_v10 = vpack.i.bf16 %v101_v8, %v98_v6  ;;  %v126_v12 = vpack.c.bf16 %v101_v8, %v101_v8 }
 0x109   :  { %1230 = vrot.lane.b32.xlu1 %v1229_v10, %s1348_s1  ;;  %1220 = vrot.lane.b32.xlu0 %v1229_v10, %s1349_s8 }
 0x10d   :  { %134 = vrot.lane.b32.xlu1 %v125_v11, %s1350_s9  ;;  %1225 = vrot.lane.b32.xlu0 %v1229_v10, %s1351_s10 }
 0x111   :  { %184 = vrot.lane.b32.xlu0 %v126_v12, %s1350_s9 }
 0x17b   :  { %v1231_v13 = vpop.permute.xlu1 %1230  ;;  %v1221_v14 = vpop.permute.xlu0 %1220 }
 0x17c   :  { %v1223_v15 = vunpack.i.h.bf16 %v1221_v14  ;;  %v1222_v16 = vunpack.i.l.bf16 %v1221_v14  ;;  %v1232_v24 = vunpack.i.l.bf16 %v1231_v13  ;;  %v1233_v27 = vunpack.i.h.bf16 %v1231_v13 }
 0x17e   :  { %v128_v17 = vpack.c.bf16 %v1223_v15, %v1223_v15  ;;  %v127_v18 = vpack.c.bf16 %v1222_v16, %v1222_v16  ;;  %v1422_v30 = vpack.c.bf16 %v1232_v24, %v1232_v24  ;;  %v1425_v31 = vpack.c.bf16 %v1233_v27, %v1233_v27 }
 0x17f   :  { %v135_v19 = vpop.permute.xlu1 %134  ;;  %v1226_v20 = vpop.permute.xlu0 %1225 }
 0x180   :  { %v1228_v21 = vunpack.i.h.bf16 %v1226_v20  ;;  %v1227_v22 = vunpack.i.l.bf16 %v1226_v20  ;;  %233 = vrot.lane.b32.xlu1 %v127_v18, %s1350_s9  ;;  %282 = vrot.lane.b32.xlu0 %v128_v17, %s1350_s9  ;;  %v141_v23 = vsel %vm136_vm2, %v135_v19, 0 }
 0x181   :  { %1111 = vmatpush3.bf16.xpose.msra.mxu1 %v141_v23 }
 0x182   :  { %v1412_v25 = vpack.c.bf16 %v1228_v21, %v1228_v21  ;;  %v1414_v26 = vpack.c.bf16 %v1227_v22, %v1227_v22  ;;  %1122 = vmatprep.subr.bf16.mxu1 %v1346_v0 }
 0x183   :  { %v185_v28 = vpop.permute.xlu0 %184 }
 0x184   :  { %v190_v29 = vsel %vm136_vm2, %v185_v28, 0  ;;  %331 = vrot.lane.b32.xlu1 %v1414_v26, %s1350_s9  ;;  %380 = vrot.lane.b32.xlu0 %v1412_v25, %s1350_s9 }
 0x185   :  { %1117 = vmatpush3.bf16.xpose.msra.mxu0 %v190_v29 }
 0x186   :  { %1128 = vmatprep.subr.bf16.mxu0 %v1346_v0 }
 0x188   :  { %1113 = vmatmul.mubr.msk.bf16.vlgmr.msra.gmra.mrb[0].mxu1 %vm136_vm2, %v125_v11  ;;  %429 = vrot.lane.b32.xlu1 %v1422_v30, %s1350_s9 }
 0x189   :  { %478 = vrot.lane.b32.xlu0 %v1425_v31, %s1350_s9  ;;  %1124 = vmatprep.mubr.msk.bf16.mxu1 %vm1347_vm0, %v1346_v0 }
 0x18c   :  { %678 = vrot.lane.b32.xlu1 %v126_v12, %s1344_s0  ;;  %1119 = vmatmul.mubr.msk.bf16.vlgmr.msra.gmra.mrb[4].mxu0 %vm136_vm2, %v126_v12 }
 0x18d   :  { %629 = vrot.lane.b32.xlu0 %v125_v11, %s1344_s0  ;;  %1130 = vmatprep.mubr.msk.bf16.mxu0 %vm1347_vm0, %v1346_v0 }
 0x190   :  { %726 = vrot.lane.b32.xlu1 %v127_v18, %s1344_s0 }
 0x191   :  { %774 = vrot.lane.b32.xlu0 %v128_v17, %s1344_s0 }
 0x1f2   :  { %v234_v32 = vpop.permute.xlu1 %233  ;;  %v283_v33 = vpop.permute.xlu0 %282 }
 0x1f3   :  { %v239_v34 = vsel %vm136_vm2, %v234_v32, 0  ;;  %v288_v35 = vsel %vm136_vm2, %v283_v33, 0 }
 0x1f4   :  { %1123 = vmatpush3.bf16.xpose.msra.mxu1 %v239_v34  ;;  %1129 = vmatpush3.bf16.xpose.msra.mxu0 %v288_v35 }
 0x1f5   :  { %1134 = vmatprep.subr.bf16.mxu1 %v1346_v0  ;;  %1140 = vmatprep.subr.bf16.mxu0 %v1346_v0 }
 0x1f6   :  { %v332_v36 = vpop.permute.xlu1 %331  ;;  %v381_v37 = vpop.permute.xlu0 %380 }
 0x1f7   :  { %v337_v38 = vsel %vm136_vm2, %v332_v36, 0  ;;  %v386_v39 = vsel %vm136_vm2, %v381_v37, 0 }
 0x1fa   :  { %v430_v40 = vpop.permute.xlu1 %429 }
 0x1fb   :  { %1125 = vmatmul.mubr.msk.bf16.vlgmr.msra.gmra.mrb[4].mxu1 %vm136_vm2, %v127_v18  ;;  %1131 = vmatmul.mubr.msk.bf16.vlgmr.msra.gmra.mrb[8].mxu0 %vm136_vm2, %v128_v17  ;;  %v479_v41 = vpop.permute.xlu0 %478  ;;  %v435_v42 = vsel %vm136_vm2, %v430_v40, 0 }
 0x1fc   :  { %1135 = vmatpush3.bf16.xpose.msra.mxu1 %v337_v38  ;;  %1141 = vmatpush3.bf16.xpose.msra.mxu0 %v386_v39  ;;  %v484_v43 = vsel %vm136_vm2, %v479_v41, 0 }
 0x1fd   :  { %1136 = vmatprep.mubr.msk.bf16.mxu1 %vm1347_vm0, %v1346_v0  ;;  %1142 = vmatprep.mubr.msk.bf16.mxu0 %vm1347_vm0, %v1346_v0 }
 0x1fe   :  { %1146 = vmatprep.subr.bf16.mxu1 %v1346_v0  ;;  %1152 = vmatprep.subr.bf16.mxu0 %v1346_v0  ;;  %v679_v44 = vpop.permute.xlu1 %678 }
 0x1ff   :  { %v630_v45 = vpop.permute.xlu0 %629  ;;  %v684_v46 = vsel %vm634_vm3, %v679_v44, 0 }
 0x200   :  { %v636_v47 = vsel %vm634_vm3, %v630_v45, 0 }
 0x202   :  { %v727_v36 = vpop.permute.xlu1 %726 }
 0x203   :  { %1137 = vmatmul.mubr.msk.bf16.vlgmr.msra.gmra.mrb[8].mxu1 %vm136_vm2, %v1414_v26  ;;  %1143 = vmatmul.mubr.msk.bf16.vlgmr.msra.gmra.mrb[12].mxu0 %vm136_vm2, %v1412_v25  ;;  %v775_v37 = vpop.permute.xlu0 %774 }
 0x204   :  { %1147 = vmatpush3.bf16.xpose.msra.mxu1 %v435_v42  ;;  %1153 = vmatpush3.bf16.xpose.msra.mxu0 %v484_v43  ;;  %v780_v48 = vsel %vm634_vm3, %v775_v37, 0 }
 0x205   :  { %1148 = vmatprep.mubr.msk.bf16.mxu1 %vm1347_vm0, %v1346_v0  ;;  %1154 = vmatprep.mubr.msk.bf16.mxu0 %vm1347_vm0, %v1346_v0 }
 0x206   :  { %1158 = vmatprep.subr.bf16.mxu1 %v1346_v0  ;;  %1164 = vmatprep.subr.bf16.mxu0 %v1346_v0 }
 0x20b   :  { %1149 = vmatmul.mubr.msk.bf16.vlgmr.msra.gmra.mrb[12].mxu1 %vm136_vm2, %v1422_v30  ;;  %1155 = vmatmul.mubr.msk.bf16.vlgmr.msra.gmra.mrb[16].mxu0 %vm136_vm2, %v1425_v31 }
 0x20c   :  { %1159 = vmatpush3.bf16.msra.mxu1 %v636_v47  ;;  %1165 = vmatpush3.bf16.msra.mxu0 %v684_v46  ;;  %v732_v46 = vsel %vm634_vm3, %v727_v36, 0 }
 0x20d   :  { %1160 = vmatprep.mubr.msk.bf16.mxu1 %vm1347_vm0, %v1346_v0  ;;  %1170 = vmatprep.subr.bf16.mxu1 %v1346_v0 }
 0x20e   :  { %1166 = vmatprep.mubr.msk.bf16.mxu0 %vm1347_vm0, %v1346_v0  ;;  %1176 = vmatprep.subr.bf16.mxu0 %v1346_v0 }
 0x25b   :  { %v177_v52 = vpop.f32.mrb[0].mxu1 }
 0x25c   :  { %v533_v53 = vsel %vm1479_vm4, %v177_v52, -1e+30  ;;  %v1114_v54 = vpop.f32.mrb[1].mxu1 }
 0x25d   :  { %v180_v55 = vpop.f32.mrb[2].mxu1  ;;  %v541_v56 = vsel %vm136_vm2, %v533_v53, -inf }
 0x25e   :  { %v1115_v57 = vpop.f32.mrb[3].mxu1  ;;  %542 = vmax.xlane.f32.xlu1 %v541_v56 }
 0x25f   :  { %v226_v58 = vpop.f32.mrb[4].mxu0 }
 0x260   :  { %v534_v59 = vsel %vm1479_vm4, %v226_v58, -1e+30  ;;  %v1120_v60 = vpop.f32.mrb[5].mxu0 }
 0x261   :  { %v229_v61 = vpop.f32.mrb[6].mxu0  ;;  %v544_v62 = vsel %vm136_vm2, %v534_v59, -inf }
 0x262   :  { %545 = vmax.xlane.f32.xlu0 %v544_v62  ;;  %v1121_v63 = vpop.f32.mrb[7].mxu0 }
 0x26f   :  { %822 = vrot.lane.b32.xlu1 %v1414_v26, %s1344_s0 }
 0x2ce   :  { %v275_v1 = vpop.f32.mrb[4].mxu1  ;;  %v324_v2 = vpop.f32.mrb[8].mxu0 }
 0x2cf   :  { %v1493_v3 = vsel %vm1479_vm4, %v275_v1, -1e+30  ;;  %v1497_v4 = vsel %vm1479_vm4, %v324_v2, -1e+30  ;;  %v1126_v5 = vpop.f32.mrb[5].mxu1  ;;  %v1132_v6 = vpop.f32.mrb[9].mxu0 }
 0x2d0   :  { %v278_v7 = vpop.f32.mrb[6].mxu1  ;;  %v327_v8 = vpop.f32.mrb[10].mxu0  ;;  %v547_v9 = vsel %vm136_vm2, %v1493_v3, -inf  ;;  %v550_v10 = vsel %vm136_vm2, %v1497_v4, -inf }
 0x2d1   :  { %v1127_v11 = vpop.f32.mrb[7].mxu1  ;;  %548 = vmax.xlane.f32.xlu0 %v547_v9  ;;  %551 = vmax.xlane.f32.xlu1 %v550_v10  ;;  %v1133_v12 = vpop.f32.mrb[11].mxu0 }
 0x2d6   :  { %v373_v13 = vpop.f32.mrb[8].mxu1  ;;  %v422_v14 = vpop.f32.mrb[12].mxu0 }
 0x2d7   :  { %v1505_v15 = vsel %vm1479_vm4, %v422_v14, -1e+30  ;;  %v1138_v16 = vpop.f32.mrb[9].mxu1  ;;  %v1144_v17 = vpop.f32.mrb[13].mxu0 }
 0x2d8   :  { %v376_v18 = vpop.f32.mrb[10].mxu1  ;;  %v425_v19 = vpop.f32.mrb[14].mxu0  ;;  %v556_v20 = vsel %vm136_vm2, %v1505_v15, -inf }
 0x2d9   :  { %v1139_v21 = vpop.f32.mrb[11].mxu1  ;;  %557 = vmax.xlane.f32.xlu1 %v556_v20  ;;  %v1145_v22 = vpop.f32.mrb[15].mxu0 }
 0x2de   :  { %v471_v23 = vpop.f32.mrb[12].mxu1  ;;  %v520_v24 = vpop.f32.mrb[16].mxu0 }
 0x2df   :  { %v1511_v26 = vsel %vm1479_vm4, %v520_v24, -1e+30  ;;  %v1150_v27 = vpop.f32.mrb[13].mxu1  ;;  %v1156_v28 = vpop.f32.mrb[17].mxu0  ;;  %v539_v50 = vsel %vm1479_vm4, %v471_v23, -1e+30 }
 0x2e0   :  { %v474_v29 = vpop.f32.mrb[14].mxu1  ;;  %v523_v32 = vpop.f32.mrb[18].mxu0  ;;  %v562_v33 = vsel %vm136_vm2, %v1511_v26, -inf  ;;  %v559_v52 = vsel %vm136_vm2, %v539_v50, -inf }
 0x2e1   :  { %v1151_v34 = vpop.f32.mrb[15].mxu1  ;;  %563 = vmax.xlane.f32.xlu1 %v562_v33  ;;  %v1157_v35 = vpop.f32.mrb[19].mxu0 }
 0x2e7   :  { %870 = vrot.lane.b32.xlu0 %v1412_v25, %s1344_s0 }
 0x2eb   :  { %v543_v38 = vpop.xlane.xlu1 %542 }
 0x2ec   :  { %v565_v39 = vsub.f32 %v533_v53, %v543_v38 }
 0x2ee   :  { %v573_v40 = vmul.f32 1.442695, %v565_v39 }
 0x2ef   :  { %v546_v41 = vpop.xlane.xlu0 %545  ;;  %v823_v55 = vpop.permute.xlu1 %822 }
 0x2f0   :  { %1236 = vpow2.f32 %v573_v40  ;;  %v566_v42 = vsub.f32 %v534_v59, %v546_v41  ;;  %v828_v9 = vsel %vm634_vm3, %v823_v55, 0 }
 0x2f2   :  { %v575_v43 = vmul.f32 1.442695, %v566_v42  ;;  %918 = vrot.lane.b32.xlu1 %v1422_v30, %s1344_s0  ;;  %v537_v30 = vsel %vm1479_vm4, %v373_v13, -1e+30 }
 0x2f3   :  { %v553_v49 = vsel %vm136_vm2, %v537_v30, -inf }
 0x2f4   :  { %1238 = vpow2.f32 %v575_v43 }
 0x2fa   :  { %v1237_v44 = vpop.eup %1236 }
 0x2fb   :  { %v621_v45 = vpack.c.bf16 %v1237_v44, %v1237_v44  ;;  %v589_v53 = vsel %vm136_vm2, %v1237_v44, 0.0 }
 0x2fd   :  { %1161 = vmatmul.mubr.msk.bf16.vlgmr.msra.gmra.mrb[16].mxu1 %vm136_vm2, %v621_v45 }
 0x2fe   :  { %v1239_v47 = vpop.eup %1238  ;;  %1171 = vmatpush3.bf16.msra.mxu1 %v732_v46  ;;  %1172 = vmatprep.mubr.msk.bf16.mxu1 %vm1347_vm0, %v1346_v0 }
 0x2ff   :  { %v622_v25 = vpack.c.bf16 %v1239_v47, %v1239_v47  ;;  %1182 = vmatprep.subr.bf16.mxu1 %v1346_v0  ;;  %v592_v54 = vsel %vm136_vm2, %v1239_v47, 0.0 }
 0x301   :  { %1167 = vmatmul.mubr.msk.bf16.vlgmr.msra.gmra.mrb[20].mxu0 %vm136_vm2, %v622_v25 }
 0x302   :  { %1177 = vmatpush3.bf16.msra.mxu0 %v780_v48  ;;  %1178 = vmatprep.mubr.msk.bf16.mxu0 %vm1347_vm0, %v1346_v0 }
 0x303   :  { %1188 = vmatprep.subr.bf16.mxu0 %v1346_v0 }
 0x306   :  { %554 = vmax.xlane.f32.xlu0 %v553_v49 }
 0x30a   :  { %560 = vmax.xlane.f32.xlu0 %v559_v52 }
 0x316   :  { %590 = vadd.xlane.f32.xlu1 %v589_v53 }
 0x320   :  { %966 = vrot.lane.b32.xlu0 %v1425_v31, %s1344_s0 }
 0x33f   :  { %593 = vadd.xlane.f32.xlu0 %v592_v54 }
 0x35e   :  { %v549_v56 = vpop.xlane.xlu0 %548  ;;  %v552_v57 = vpop.xlane.xlu1 %551 }
 0x35f   :  { %v567_v58 = vsub.f32 %v1493_v3, %v549_v56  ;;  %v568_v51 = vsub.f32 %v1497_v4, %v552_v57 }
 0x361   :  { %v577_v59 = vmul.f32 1.442695, %v567_v58  ;;  %v579_v60 = vmul.f32 1.442695, %v568_v51 }
 0x362   :  { %v871_v2 = vpop.permute.xlu0 %870 }
 0x363   :  { %1240 = vpow2.f32 %v577_v59  ;;  %v876_v10 = vsel %vm634_vm3, %v871_v2, 0 }
 0x364   :  { %1242 = vpow2.f32 %v579_v60 }
 0x366   :  { %v558_v61 = vpop.xlane.xlu1 %557 }
 0x367   :  { %v570_v62 = vsub.f32 %v1505_v15, %v558_v61 }
 0x369   :  { %v583_v63 = vmul.f32 1.442695, %v570_v62 }
 0x36b   :  { %1244 = vpow2.f32 %v583_v63 }
 0x36d   :  { %v1241_v31 = vpop.eup %1240 }
 0x36e   :  { %v1243_v1 = vpop.eup %1242  ;;  %v564_v5 = vpop.xlane.xlu1 %563  ;;  %v595_v6 = vsel %vm136_vm2, %v1241_v31, 0.0  ;;  %v623_v7 = vpack.c.bf16 %v1241_v31, %v1241_v31 }
 0x36f   :  { %v572_v3 = vsub.f32 %v1511_v26, %v564_v5  ;;  %596 = vadd.xlane.f32.xlu0 %v595_v6  ;;  %v598_v4 = vsel %vm136_vm2, %v1243_v1, 0.0  ;;  %v624_v8 = vpack.c.bf16 %v1243_v1, %v1243_v1 }
 0x370   :  { %599 = vadd.xlane.f32.xlu1 %v598_v4  ;;  %1173 = vmatmul.mubr.msk.bf16.vlgmr.msra.gmra.mrb[20].mxu1 %vm136_vm2, %v623_v7 }
 0x371   :  { %v587_v11 = vmul.f32 1.442695, %v572_v3  ;;  %1179 = vmatmul.mubr.msk.bf16.vlgmr.msra.gmra.mrb[24].mxu0 %vm136_vm2, %v624_v8  ;;  %1183 = vmatpush3.bf16.msra.mxu1 %v828_v9 }
 0x372   :  { %1189 = vmatpush3.bf16.msra.mxu0 %v876_v10  ;;  %1190 = vmatprep.mubr.msk.bf16.mxu0 %vm1347_vm0, %v1346_v0  ;;  %v919_v28 = vpop.permute.xlu1 %918 }
 0x373   :  { %1246 = vpow2.f32 %v587_v11  ;;  %1200 = vmatprep.subr.bf16.mxu0 %v1346_v0  ;;  %1184 = vmatprep.mubr.msk.bf16.mxu1 %vm1347_vm0, %v1346_v0  ;;  %v924_v33 = vsel %vm634_vm3, %v919_v28, 0 }
 0x374   :  { %1194 = vmatprep.subr.bf16.mxu1 %v1346_v0 }
 0x375   :  { %v1245_v12 = vpop.eup %1244 }
 0x376   :  { %v604_v13 = vsel %vm136_vm2, %v1245_v12, 0.0  ;;  %v626_v14 = vpack.c.bf16 %v1245_v12, %v1245_v12 }
 0x377   :  { %605 = vadd.xlane.f32.xlu1 %v604_v13 }
 0x379   :  { %1191 = vmatmul.mubr.msk.bf16.vlgmr.msra.gmra.mrb[28].mxu0 %vm136_vm2, %v626_v14 }
 0x37a   :  { %1202 = vmatprep.mubr.msk.bf16.mxu0 %vm1347_vm0, %v1346_v0 }
 0x37d   :  { %v1247_v15 = vpop.eup %1246 }
 0x37e   :  { %v610_v16 = vsel %vm136_vm2, %v1247_v15, 0.0  ;;  %v628_v26 = vpack.c.bf16 %v1247_v15, %v1247_v15 }
 0x37f   :  { %611 = vadd.xlane.f32.xlu1 %v610_v16 }
 0x393   :  { %v555_v17 = vpop.xlane.xlu0 %554 }
 0x394   :  { %v569_v18 = vsub.f32 %v537_v30, %v555_v17 }
 0x396   :  { %v581_v19 = vmul.f32 1.442695, %v569_v18 }
 0x397   :  { %v561_v20 = vpop.xlane.xlu0 %560 }
 0x398   :  { %1248 = vpow2.f32 %v581_v19  ;;  %v571_v21 = vsub.f32 %v539_v50, %v561_v20 }
 0x39a   :  { %v585_v22 = vmul.f32 1.442695, %v571_v21 }
 0x39b   :  { %v967_v23 = vpop.permute.xlu0 %966 }
 0x39c   :  { %1250 = vpow2.f32 %v585_v22  ;;  %v972_v24 = vsel %vm634_vm3, %v967_v23, 0 }
 0x39d   :  { %1201 = vmatpush3.bf16.msra.mxu0 %v972_v24 }
 0x3a0   :  { %1203 = vmatmul.mubr.msk.bf16.vlgmr.msra.gmra.mrb[32].mxu0 %vm136_vm2, %v628_v26 }
 0x3a2   :  { %v1249_v27 = vpop.eup %1248 }
 0x3a3   :  { %v601_v29 = vsel %vm136_vm2, %v1249_v27, 0.0  ;;  %v625_v32 = vpack.c.bf16 %v1249_v27, %v1249_v27  ;;  %v591_v37 = vpop.xlane.xlu1 %590 }
 0x3a4   :  { %602 = vadd.xlane.f32.xlu0 %v601_v29  ;;  %1252 = vrcp.f32 %v591_v37 }
 0x3a5   :  { %1185 = vmatmul.mubr.msk.bf16.vlgmr.msra.gmra.mrb[24].mxu1 %vm136_vm2, %v625_v32 }
 0x3a6   :  { %v1251_v34 = vpop.eup %1250  ;;  %1195 = vmatpush3.bf16.msra.mxu1 %v924_v33  ;;  %1196 = vmatprep.mubr.msk.bf16.mxu1 %vm1347_vm0, %v1346_v0 }
 0x3a7   :  { %v607_v35 = vsel %vm136_vm2, %v1251_v34, 0.0  ;;  %v627_v36 = vpack.c.bf16 %v1251_v34, %v1251_v34 }
 0x3a8   :  { %608 = vadd.xlane.f32.xlu0 %v607_v35 }
 0x3ad   :  { %1197 = vmatmul.mubr.msk.bf16.vlgmr.msra.gmra.mrb[28].mxu1 %vm136_vm2, %v627_v36 }
 0x3ae   :  { %v1253_v39 = vpop.eup %1252 }
 0x3cc   :  { %v594_v38 = vpop.xlane.xlu0 %593 }
 0x3cd   :  { %1254 = vrcp.f32 %v594_v38 }
 0x3d0   :  { %v672_v40 = vpop.f32.mrb[16].mxu1 }
 0x3d1   :  { %v1014_v41 = vmul.f32 %v1253_v39, %v672_v40  ;;  %v1162_v42 = vpop.f32.mrb[17].mxu1 }
 0x3d2   :  { %v675_v43 = vpop.f32.mrb[18].mxu1 }
 0x3d3   :  { %1022 = vst.msk [vmem:[#allocation7] sm:$0xff] %vm136_vm2, %v1014_v41  ;;  %v1163_v44 = vpop.f32.mrb[19].mxu1 }
 0x3d4   :  { %v720_v45 = vpop.f32.mrb[20].mxu0 }
 0x3d5   :  { %v1168_v0 = vpop.f32.mrb[21].mxu0 }
 0x3d6   :  { %v723_v46 = vpop.f32.mrb[22].mxu0 }
 0x3d7   :  { %v1255_v47 = vpop.eup %1254  ;;  %v1169_v25 = vpop.f32.mrb[23].mxu0 }
 0x3d8   :  { %v1015_v48 = vmul.f32 %v1255_v47, %v720_v45 }
 0x3da   :  { %1023 = vst.msk [vmem:[#allocation7 + $0x8] sm:$0xff] %vm136_vm2, %v1015_v48 }
 0x3fc   :  { %v597_v30 = vpop.xlane.xlu0 %596 }
 0x3fd   :  { %v600_v49 = vpop.xlane.xlu1 %599  ;;  %1256 = vrcp.f32 %v597_v30 }
 0x3fe   :  { %1258 = vrcp.f32 %v600_v49 }
 0x404   :  { %v606_v50 = vpop.xlane.xlu1 %605 }
 0x405   :  { %1260 = vrcp.f32 %v606_v50 }
 0x407   :  { %v1257_v52 = vpop.eup %1256 }
 0x408   :  { %v1259_v54 = vpop.eup %1258 }
 0x40c   :  { %v612_v7 = vpop.xlane.xlu1 %611 }
 0x40d   :  { %1262 = vrcp.f32 %v612_v7 }
 0x40f   :  { %v1261_v63 = vpop.eup %1260 }
 0x417   :  { %v1263_v4 = vpop.eup %1262 }
 0x431   :  { %v603_v3 = vpop.xlane.xlu0 %602 }
 0x432   :  { %1264 = vrcp.f32 %v603_v3 }
 0x435   :  { %v609_v8 = vpop.xlane.xlu0 %608 }
 0x436   :  { %1266 = vrcp.f32 %v609_v8 }
 0x43c   :  { %v1265_v14 = vpop.eup %1264 }
 0x440   :  { %v1267_v20 = vpop.eup %1266 }
 0x443   :  { %v768_v53 = vpop.f32.mrb[20].mxu1 }
 0x444   :  { %v1016_v55 = vmul.f32 %v1257_v52, %v768_v53  ;;  %v816_v56 = vpop.f32.mrb[24].mxu0  ;;  %v1174_v57 = vpop.f32.mrb[21].mxu1 }
 0x445   :  { %v1017_v58 = vmul.f32 %v1259_v54, %v816_v56  ;;  %v1180_v51 = vpop.f32.mrb[25].mxu0  ;;  %v771_v59 = vpop.f32.mrb[22].mxu1 }
 0x446   :  { %1024 = vst.msk [vmem:[#allocation7 + $0x10] sm:$0xff] %vm136_vm2, %v1016_v55  ;;  %v819_v60 = vpop.f32.mrb[26].mxu0  ;;  %v1175_v61 = vpop.f32.mrb[23].mxu1 }
 0x447   :  { %1025 = vst.msk [vmem:[#allocation7 + $0x18] sm:$0xff] %vm136_vm2, %v1017_v58  ;;  %v1181_v62 = vpop.f32.mrb[27].mxu0 }
 0x44c   :  { %v912_v31 = vpop.f32.mrb[28].mxu0 }
 0x44d   :  { %v1019_v1 = vmul.f32 %v1261_v63, %v912_v31  ;;  %v1192_v2 = vpop.f32.mrb[29].mxu0 }
 0x44e   :  { %v915_v5 = vpop.f32.mrb[30].mxu0 }
 0x44f   :  { %1027 = vst.msk [vmem:[#allocation7 + $0x28] sm:$0xff] %vm136_vm2, %v1019_v1  ;;  %v1193_v6 = vpop.f32.mrb[31].mxu0 }
 0x473   :  { %v1008_v9 = vpop.f32.mrb[32].mxu0 }
 0x474   :  { %v1021_v10 = vmul.f32 %v1263_v4, %v1008_v9  ;;  %v1204_v11 = vpop.f32.mrb[33].mxu0 }
 0x475   :  { %v1011_v12 = vpop.f32.mrb[34].mxu0 }
 0x476   :  { %1029 = vst.msk [vmem:[#allocation7 + $0x38] sm:$0xff] %vm136_vm2, %v1021_v10  ;;  %v1205_v13 = vpop.f32.mrb[35].mxu0 }
 0x478   :  { %v864_v15 = vpop.f32.mrb[24].mxu1 }
 0x479   :  { %v1018_v16 = vmul.f32 %v1265_v14, %v864_v15  ;;  %v1186_v17 = vpop.f32.mrb[25].mxu1 }
 0x47a   :  { %v867_v18 = vpop.f32.mrb[26].mxu1 }
 0x47b   :  { %1026 = vst.msk [vmem:[#allocation7 + $0x20] sm:$0xff] %vm136_vm2, %v1018_v16  ;;  %v1187_v19 = vpop.f32.mrb[27].mxu1 }
 0x480   :  { %v960_v21 = vpop.f32.mrb[28].mxu1 }
 0x481   :  { %v1020_v22 = vmul.f32 %v1267_v20, %v960_v21  ;;  %v1198_v23 = vpop.f32.mrb[29].mxu1 }
 0x482   :  { %v963_v24 = vpop.f32.mrb[30].mxu1 }
 0x483   :  { %1028 = vst.msk [vmem:[#allocation7 + $0x30] sm:$0xff] %vm136_vm2, %v1020_v22  ;;  %v1199_v26 = vpop.f32.mrb[31].mxu1 }
 0x484   :  { %1323 = shalt.err (!%p1320_p6)
}
 0x485   :  { %s1324_s16 = scalar_lea.hbm %s1594_s2, 1024 }
 0x486   :  { %p1325_p7 = scmp.ne.s32.totalorder %s1594_s2, %s1324_s16  ;;  %p1328_p8 = scmp.lt.u32.totalorder %s1324_s16, %s1594_s2 }
 0x488   :  { %p1330_p9 = pnand %p1328_p8, %p1325_p7 }
 0x48a   :  { %1333 = shalt.err (!%p1330_p9)
}
 0x48b   :  { %1041 = dma.vmem_to_hbm [thread:$0]  %s1036_s12, 1024, %s1594_s2, [#allocation4], %s1341_s19, %s1341_s19, %s1342_s20  }
 0x48c   :  { %1338 = dma.done.wait [#allocation4], 1024  }
 0x48d   :  { %1339 = vsyncadd [#allocation4], 4294966272 }
 0x48e   :  { %1045 = vsyncpa [#allocation3], 1 }
 0x48f   :  { %1046 = vsyncpa [#allocation6], 1 }
 0x490   :  { %1047 = vsyncpa [#allocation4], 1 }

</bundles_post_ra>
